<compile_context>
chip_gen: v5e
topology: v5e:2x2
jax: 0.10.0
libtpu: 0.0.40
codegen_flags: <defaults>
</compile_context>

<pallas_src>
import functools
import numpy as np

import jax
import jax.numpy as jnp
from jax.experimental import pallas as pl
from jax.experimental.pallas import tpu as pltpu


# --------------------------------------------------------------------------
# Pallas kernel: fused 1x1 conv + InstanceNorm2d + ReLU, one batch per step
# --------------------------------------------------------------------------
def _conv1x1_in_relu_kernel(x_ref, w_ref, b_ref, o_ref, *, eps):
    """
    x_ref: (1, C_in, HW)   input activations (f32)
    w_ref: (C_out, C_in)   conv weight, pre-cast to bf16 in the wrapper
    b_ref: (C_out, 1)      conv bias, f32 (pre-reshaped in the wrapper)
    o_ref: (1, C_out, HW)  output (lane-dense along HW)
    """
    x = x_ref[0]                                                 # (C_in, HW)

    # 1x1 conv == channel matmul on the MXU; bf16 operands, f32 accumulation.
    y = jnp.dot(w_ref[...], x.astype(jnp.bfloat16),
                preferred_element_type=jnp.float32)              # (C_out, HW) f32

    # Conv bias (mathematically cancelled by the instance-norm mean subtraction,
    # kept for forward-pass fidelity; cost is one broadcast add).
    y = y + b_ref[...]

    # InstanceNorm2d: per (batch, channel) over spatial dims, biased variance,
    # eps inside the sqrt, no affine (PyTorch default).  Centered value computed
    # once and reused for variance and normalization.
    mu = jnp.mean(y, axis=-1, keepdims=True)                     # XLU reduction
    yc = y - mu                                                  # reused below
    var = jnp.mean(yc * yc, axis=-1, keepdims=True)              # XLU reduction
    yn = yc * jax.lax.rsqrt(var + eps)                           # EUP rsqrt

    # ReLU
    o_ref[0] = jnp.maximum(yn, 0.0).astype(o_ref.dtype)


# --------------------------------------------------------------------------
# Wrapper
# --------------------------------------------------------------------------
def conv2d_relu_1x1_pallas(x, w, b, *, eps=1e-5):
    """x: (B, C_in, H, W) NCHW; w: (C_out, C_in) (squeezed 1x1 conv weight); b: (C_out,)."""
    B, C_in, H, W = x.shape
    C_out = w.shape[0]
    HW = H * W

    x2 = x.reshape(B, C_in, HW)                       # contiguous view, no transpose
    w_bf16 = w.astype(jnp.bfloat16)                   # cast constants once, outside kernel
    b2 = b.reshape(C_out, 1).astype(jnp.float32)

    kern = functools.partial(_conv1x1_in_relu_kernel, eps=eps)
    out = pl.pallas_call(
        kern,
        out_shape=jax.ShapeDtypeStruct((B, C_out, HW), x.dtype),
        grid=(B,),
        in_specs=[
            pl.BlockSpec((1, C_in, HW), lambda bi: (bi, 0, 0)),   # per-batch activation
            pl.BlockSpec((C_out, C_in), lambda bi: (0, 0)),       # constant weight block
            pl.BlockSpec((C_out, 1), lambda bi: (0, 0)),          # constant bias block
        ],
        out_specs=pl.BlockSpec((1, C_out, HW), lambda bi: (bi, 0, 0)),
        compiler_params=pltpu.CompilerParams(
            dimension_semantics=("parallel",)),       # shards B across TensorCores
    )(x2, w_bf16, b2)
    return out.reshape(B, C_out, H, W)


# --------------------------------------------------------------------------
# Pure-JAX reference (same math; inputs rounded to bf16 to match the kernel's
# chosen MXU operand precision — accumulation is f32 in both)
# --------------------------------------------------------------------------
def conv2d_relu_1x1_ref(x, w, b, *, eps=1e-5):
    xr = x.astype(jnp.bfloat16).astype(jnp.float32)
    wr = w.astype(jnp.bfloat16).astype(jnp.float32)
    y = jnp.einsum("oi,bihw->bohw", wr, xr) + b.reshape(1, -1, 1, 1)
    mu = y.mean(axis=(2, 3), keepdims=True)
    var = ((y - mu) ** 2).mean(axis=(2, 3), keepdims=True)
    yn = (y - mu) / jnp.sqrt(var + eps)
    return jnp.maximum(yn, 0.0).astype(x.dtype)


# --------------------------------------------------------------------------
if __name__ == "__main__":
    # Small config consistent with the module: B=2, C_in=4, C_out=8, 16x16 spatial.
    B, C_in, C_out, H, W = 2, 4, 8, 16, 16

    key = jax.random.PRNGKey(0)
    kx, kw, kb = jax.random.split(key, 3)
    x = jax.random.normal(kx, (B, C_in, H, W), jnp.float32)
    w = jax.random.normal(kw, (C_out, C_in), jnp.float32) * 0.5   # conv weight (1x1, squeezed)
    b = jax.random.normal(kb, (C_out,), jnp.float32) * 0.1        # conv bias

    out = conv2d_relu_1x1_pallas(x, w, b)
    out = jax.block_until_ready(out)

    ref = conv2d_relu_1x1_ref(x, w, b)
    np.testing.assert_allclose(np.asarray(out), np.asarray(ref),
                               rtol=1e-3, atol=1e-3)
    print("KERNEL_OK")
</pallas_src>

<mosaic_0001>
module attributes {stable_mosaic.version = 11 : i64} {
  func.func @_conv1x1_in_relu_kernel(%arg0: i32, %arg1: memref<1x4x256xf32, #tpu.memory_space<vmem>>, %arg2: memref<8x4xbf16, #tpu.memory_space<vmem>>, %arg3: memref<8x1xf32, #tpu.memory_space<vmem>>, %arg4: memref<1x8x256xf32, #tpu.memory_space<vmem>>) attributes {dimension_semantics = [#tpu.dimension_semantics<parallel>], iteration_bounds = array<i64: 2>, scalar_prefetch = 0 : i64, scratch_operands = 0 : i64, tpu.core_type = #tpu.core_type<tc>, window_params = [{transform_indices = @transform_0, window_bounds = array<i64: 1, 4, 256>}, {pipeline_mode = #tpu.pipeline_mode<synchronous>, transform_indices = @transform_1, window_bounds = array<i64: 8, 4>}, {pipeline_mode = #tpu.pipeline_mode<synchronous>, transform_indices = @transform_2, window_bounds = array<i64: 8, 1>}, {transform_indices = @transform_3, window_bounds = array<i64: 1, 8, 256>}]} {
    %c0 = arith.constant 0 : index
    %c0_0 = arith.constant 0 : index
    %c0_1 = arith.constant 0 : index
    %0 = vector.load %arg1[%c0, %c0_0, %c0_1] : memref<1x4x256xf32, #tpu.memory_space<vmem>>, vector<1x4x256xf32>
    %1 = vector.shape_cast %0 : vector<1x4x256xf32> to vector<4x256xf32>
    %c0_2 = arith.constant 0 : index
    %c0_3 = arith.constant 0 : index
    %2 = vector.load %arg2[%c0_2, %c0_3] : memref<8x4xbf16, #tpu.memory_space<vmem>>, vector<8x4xbf16>
    %3 = arith.truncf %1 : vector<4x256xf32> to vector<4x256xbf16>
    %cst = arith.constant dense<0.000000e+00> : vector<8x256xf32>
    %4 = tpu.matmul %2, %3, %cst {dimension_numbers = #tpu.dot_dimension_numbers<[1], [0], [0], [1], [0, 0, 1, 1], [], []>} : vector<8x4xbf16>, vector<4x256xbf16>, vector<8x256xf32> -> vector<8x256xf32>
    %c0_4 = arith.constant 0 : index
    %c0_5 = arith.constant 0 : index
    %5 = vector.load %arg3[%c0_4, %c0_5] : memref<8x1xf32, #tpu.memory_space<vmem>>, vector<8x1xf32>
    %6 = vector.broadcast %5 : vector<8x1xf32> to vector<8x256xf32>
    %7 = arith.addf %4, %6 : vector<8x256xf32>
    %cst_6 = arith.constant dense<0.000000e+00> : vector<8xf32>
    %8 = vector.multi_reduction <add>, %7, %cst_6 [1] : vector<8x256xf32> to vector<8xf32>
    %9 = vector.shape_cast %8 : vector<8xf32> to vector<8x1xf32>
    %cst_7 = arith.constant 2.560000e+02 : f32
    %10 = vector.broadcast %cst_7 : f32 to vector<8x1xf32>
    %11 = arith.divf %9, %10 : vector<8x1xf32>
    %12 = vector.broadcast %11 : vector<8x1xf32> to vector<8x256xf32>
    %13 = arith.subf %7, %12 : vector<8x256xf32>
    %14 = arith.mulf %13, %13 : vector<8x256xf32>
    %cst_8 = arith.constant dense<0.000000e+00> : vector<8xf32>
    %15 = vector.multi_reduction <add>, %14, %cst_8 [1] : vector<8x256xf32> to vector<8xf32>
    %16 = vector.shape_cast %15 : vector<8xf32> to vector<8x1xf32>
    %cst_9 = arith.constant 2.560000e+02 : f32
    %17 = vector.broadcast %cst_9 : f32 to vector<8x1xf32>
    %18 = arith.divf %16, %17 : vector<8x1xf32>
    %cst_10 = arith.constant 9.99999974E-6 : f32
    %19 = vector.broadcast %cst_10 : f32 to vector<8x1xf32>
    %20 = arith.addf %18, %19 : vector<8x1xf32>
    %21 = math.rsqrt %20 : vector<8x1xf32>
    %22 = vector.broadcast %21 : vector<8x1xf32> to vector<8x256xf32>
    %23 = arith.mulf %13, %22 : vector<8x256xf32>
    %cst_11 = arith.constant 0.000000e+00 : f32
    %24 = vector.broadcast %cst_11 : f32 to vector<8x256xf32>
    %25 = arith.maximumf %23, %24 : vector<8x256xf32>
    %c0_12 = arith.constant 0 : index
    %c0_13 = arith.constant 0 : index
    %c0_14 = arith.constant 0 : index
    %26 = vector.load %arg4[%c0_12, %c0_13, %c0_14] : memref<1x8x256xf32, #tpu.memory_space<vmem>>, vector<1x8x256xf32>
    %27 = vector.shape_cast %26 : vector<1x8x256xf32> to vector<8x256xf32>
    %28 = vector.shape_cast %25 : vector<8x256xf32> to vector<1x8x256xf32>
    tpu.vector_store %arg4[%c0_12, %c0_13, %c0_14], %28 {strides = array<i32>} : memref<1x8x256xf32, #tpu.memory_space<vmem>>, vector<1x8x256xf32>,
    return
  }
  func.func @transform_0(%arg0: i32) -> (i32, i32, i32) {
    %c0_i32 = arith.constant 0 : i32
    %c0_i32_0 = arith.constant 0 : i32
    %c0_i32_1 = arith.constant 0 : i32
    return %arg0, %c0_i32, %c0_i32_0 : i32, i32, i32
  }
  func.func @transform_1(%arg0: i32) -> (i32, i32) {
    %c0_i32 = arith.constant 0 : i32
    %c0_i32_0 = arith.constant 0 : i32
    %c0_i32_1 = arith.constant 0 : i32
    return %c0_i32, %c0_i32_0 : i32, i32
  }
  func.func @transform_2(%arg0: i32) -> (i32, i32) {
    %c0_i32 = arith.constant 0 : i32
    %c0_i32_0 = arith.constant 0 : i32
    %c0_i32_1 = arith.constant 0 : i32
    return %c0_i32, %c0_i32_0 : i32, i32
  }
  func.func @transform_3(%arg0: i32) -> (i32, i32, i32) {
    %c0_i32 = arith.constant 0 : i32
    %c0_i32_0 = arith.constant 0 : i32
    %c0_i32_1 = arith.constant 0 : i32
    return %arg0, %c0_i32, %c0_i32_0 : i32, i32, i32
  }
}

</mosaic_0001>

<bundles_post_ra>
// kernel: tpu_custom_call.1
= control target key start
LH: loop header
LB: loop body
LE: loop exit
PB: predicated region body
PF: predicated region fallthrough
CT: control target
= control target key end

     0   :  { %8 = vsyncpa [#allocation3], 0  ;;  %s691_s0 = inlined_call_operand.hbm [shape: f32[2,4,256], index: 0, kind: input, shape index: {}]   ;;  %s692_s1 = inlined_call_operand.vmem [shape: bf16[8,4], index: 1, kind: input, shape index: {}]   ;;  %s693_s2 = inlined_call_operand.vmem [shape: f32[8,1], index: 2, kind: input, shape index: {}]   ;;  %s694_s3 = inlined_call_operand.hbm [shape: f32[2,8,256], index: 3, kind: output, shape index: {}]  }
   0x1   :  { %10 = vsyncpa [#allocation3 + $0x1], 0 }
   0x2   :  { %11 = vsyncpa [#allocation4], 0 }
   0x3   :  { %13 = vsyncpa [#allocation4 + $0x1], 0  ;;  %s557_s12 = smov 0   ;;  %s559_s13 = smov 0  }
   0x4   :  { %s561_s14 = smov 0   ;;  %s563_s15 = smov 0  }
   0x5 LB: > { %s578_s16 = sadd.s32 4294967295, %s533_s15   ;;  %s366_s17 = sadd.s32 4294967294, %s533_s15   ;;  %s533_s15 = sphi %s563_s15, %s704_s15   ;;  %s529_s14 = sphi %s561_s14, %s703_s14   ;;  %s525_s13 = sphi %s559_s13, %s702_s13   ;;  %s521_s12 = sphi %s557_s12, %s701_s12  }
   0x6   : > { %s582_s18 = sadd.s32 1, %s533_s15   ;;  %s26_s19 = sadd.s32 1, %s529_s14 }
   0x7   : > { %s23_s20 = ssub.s32 %s533_s15, %s582_s18  ;;  %p33_p0 = scmp.ne.s32.totalorder %s529_s14, %s525_s13 }
   0x8   : > { %p24_p1 = scmp.eq.s32.totalorder %s23_s20, 0  ;;  %p34_p2 = scmp.eq.s32.totalorder %s533_s15, 0 }
   0x9   : > { %p39_p3 = scmp.ne.s32.totalorder %s525_s13, %s521_s12  ;;  %p40_p4 = scmp.eq.s32.totalorder %s578_s16, 0 }
   0xa   : > { %s594_s21 = scalar_select %p24_p1, %s529_s14, %s26_s19  }
   0xb   : > { %p596_p5 = por %p34_p2, %p33_p0  ;;  %p600_p6 = por %p40_p4, %p39_p3 }
   0xc   : > { %p105_p7 = scmp.eq.s32.totalorder %s578_s16, 1  ;;  %p111_p8 = scmp.eq.s32.totalorder %s366_s17, 1 }
   0xd   : > { %p396_p10 = scmp.lt.s32.totalorder %s533_s15, 2  ;;  %s137_s26 = sand.u32 1, %s529_s14  }
   0xe   : > { %p607_p11 = por %p105_p7, %p33_p0  ;;  %p611_p12 = por %p111_p8, %p39_p3 }
   0xf   : > { %s382_s27 = sshll.u32 %s533_s15, 3  ;;  %s369_s28 = sshll.u32 %s137_s26, 3 }
  0x10   : > { %s146_s4 = scalar_lea.hbm %s691_s0, %s382_s27  ;;  %s141_s6 = scalar_lea.vmem [#allocation2], %s369_s28 }
  0x11   : > { %s148_s5 = sshll.u32 %s146_s4, 4  ;;  %s150_s7 = sshll.u32 %s141_s6, 4  ;;  %s149_s5 = int_to_ptr.hbm [resolvable:$true] %s148_s5  ;;  %s151_s7 = int_to_ptr.vmem [resolvable:$true] %s150_s7 }
  0x12   : > { %p622_p13 = pnand %p396_p10, %p596_p5  ;;  %p372_p0 = scmp.ge.s32.totalorder %s533_s15, 1 }
  0x13   : > { %p155_p1 = scmp.lt.s32.totalorder %s533_s15, 3  ;;  %s138_s9 = scalar_lea.sflag [#allocation3], %s137_s26 }
  0x14   : > { %s437_s10 = sshra.s32 %s149_s5, 4  ;;  %p441_p3 = pneg %p622_p13  ;;  %s438_s10 = int_to_ptr.hbm [resolvable:$true] %s437_s10 }
  0x15   : > { %s439_s11 = scalar_lea.hbm %s438_s10, 8  ;;  %s444_s20 = scalar_lea.hbm %s691_s0, 16 }
  0x16   : > { %p440_p2 = scmp.ne.s32.totalorder %s438_s10, %s439_s11  ;;  %p445_p5 = scmp.lt.s32.totalorder %s438_s10, %s691_s0 }
  0x17   : > { %p446_p8 = scmp.lt.s32.totalorder %s444_s20, %s439_s11 }
  0x18   : > { %p442_p4 = pnand %p441_p3, %p440_p2 }
  0x19   : > { %p447_p10 = por %p446_p8, %p445_p5 }
  0x1a   : > { %p443_p7 = pneg %p442_p4 }
  0x1c   : > { %p448_p9 = pnand %p447_p10, %p443_p7 }
  0x1e   : > { %451 = shalt.err (!%p448_p9)
}
  0x1f   : > { %391 = dma.hbm_to_vmem [thread:$0]  (!%p622_p13), %s149_s5, 128, %s151_s7, %s138_s9  }
  0x20   : > { %p156_p2 = pnand %p372_p0, %p155_p1 }
  0x21   : > { %s643_s26 = sand.u32 (!%p156_p2), 1, %s525_s13  }
  0x22   : > { %159 = sbr.rel (%p156_p2) target bundleno = 455 (0x1c7), region = 32  ;;  %s373_s28 = sshll.u32 (!%p156_p2), %s643_s26, 3 }
  0x23   : > { %s162_s29 = scalar_lea.sflag (!%p156_p2), [#allocation3], %s643_s26  ;;  %s165_s30 = scalar_lea.vmem (!%p156_p2), [#allocation2], %s373_s28 }
  0x27   : > { %512 = dma.done.wait (%p600_p6), %s162_s29, 128  }
  0x28   : > { %514 = vsyncadd (%p600_p6), %s162_s29, 4294967168  ;;  %v535_v0 = vmov 0   ;;  %v190_v1 = vld [vmem:[%s165_s30] sm:$0xff]  ;;  %v200_v2 = vld [vmem:[%s693_s2] sm:$0xff]  ;;  %vm210_vm0 = vcmask 1041408   ;;  %vm206_vm1 = vcmask 31744  }
  0x29   : > { %432 = vset.pattern.permute.xlu0 %v535_v0  ;;  %193 = vst [vmem:[#allocation1] ss:$2 sm:$0xff] %v190_v1  ;;  %v191_v9 = vld [vmem:[%s692_s1] sm:$0xf]  ;;  %v536_v18 = vmov 256.0   ;;  %s374_s7 = sshll.u32 %s643_s26, 4 }
  0x2a   : > { %203 = vperm.xlu0 %432, %v200_v2   ;;  %433 = vrcp.f32 %v536_v18  ;;  %s383_s8 = sshll.u32 %s578_s16, 4  ;;  %s188_s17 = scalar_lea.vmem [#allocation5], %s374_s7 }
  0x2b   : > { %s291_s11 = scalar_lea.hbm %s694_s3, %s383_s8  ;;  %s293_s19 = sshll.u32 %s188_s17, 4  ;;  %s294_s19 = int_to_ptr.vmem [resolvable:$true] %s293_s19 }
  0x2c   : > { %s295_s20 = sshll.u32 %s291_s11, 4  ;;  %s280_s16 = scalar_lea.sflag [#allocation4], %s643_s26  ;;  %s296_s20 = int_to_ptr.hbm [resolvable:$true] %s295_s20 }
  0x2d   : > { %s481_s22 = sshra.s32 %s296_s20, 4  ;;  %s487_s30 = scalar_lea.hbm %s694_s3, 32  ;;  %s482_s22 = int_to_ptr.hbm [resolvable:$true] %s481_s22 }
  0x2e   : > { %s483_s27 = scalar_lea.hbm %s482_s22, 16  ;;  %p488_p0 = scmp.lt.s32.totalorder %s482_s22, %s694_s3 }
  0x2f   : > { %p484_p6 = scmp.ne.s32.totalorder %s482_s22, %s483_s27  ;;  %p489_p1 = scmp.lt.s32.totalorder %s487_s30, %s483_s27 }
  0x30   : > { %v194_v3 = vld.sshfl [vmem:[#allocation1] sm:$0xff pattern:$0x75316420]  ;;  %v195_v4 = vld.sshfl [vmem:[#allocation1 + $0x8] sm:$0xff pattern:$0x75316420]  ;;  %v434_v19 = vpop.eup %433 }
  0x31   : > { %v198_v5 = vpack.c.bf16 %v194_v3, %v194_v3  ;;  %v199_v6 = vpack.c.bf16 %v195_v4, %v195_v4  ;;  %v247_v20 = vmul.f32 256.0, %v434_v19  ;;  %vm251_vm2 = vweird.f32 %v434_v19  ;;  %p485_p9 = pnand %p484_p6, %p607_p11  ;;  %p490_p3 = por %p489_p1, %p488_p0 }
  0x33   : > { %v212_v7 = vsel %vm210_vm0, %v198_v5, 0  ;;  %v215_v8 = vsel %vm210_vm0, %v199_v6, 0  ;;  %v248_v21 = vsub.f32 1.0, %v247_v20  ;;  %p486_p13 = pneg %p485_p9 }
  0x34   : > { %224 = vmatpush.bf16.msra.mxu0 %v212_v7  ;;  %237 = vmatpush.bf16.msra.mxu1 %v215_v8 }
  0x35   : > { %v249_v22 = vmul.f32 %v434_v19, %v248_v21  ;;  %p491_p4 = pnand %p490_p3, %p486_p13 }
  0x37   : > { %375 = vmatmul.msk.bf16.vlgmr.msra.gmra.mxu0 %vm206_vm1, %v191_v9  ;;  %376 = vmatmul.msk.bf16.vlgmr.msra.gmra.mxu1 %vm206_vm1, %v191_v9  ;;  %v250_v23 = vadd.f32 %v434_v19, %v249_v22 }
  0x39   : > { %v252_v24 = vsel %vm251_vm2, %v434_v19, %v250_v23 }
  0x9c   : > { %v204_v10 = vpop.permute.xlu0 %203 }
  0xb4   : > { %v226_v11 = vpop.f32.mrf.mxu0  ;;  %v239_v12 = vpop.f32.mrf.mxu1 }
  0xb5   : > { %v227_v13 = vadd.f32 %v226_v11, %v204_v10  ;;  %v240_v14 = vadd.f32 %v239_v12, %v204_v10 }
  0xb7   : > { %v243_v15 = vadd.f32 %v240_v14, %v227_v13 }
  0xb9   : > { %244 = vadd.xlane.f32.xlu0 %v243_v15 }
  0xbc   : > { %v228_v16 = vpop.f32.mrf.mxu0  ;;  %v241_v17 = vpop.f32.mrf.mxu1 }
 0x12c   : > { %v245_v25 = vpop.xlane.xlu0 %244 }
 0x12d   : > { %v253_v26 = vmul.f32 %v252_v24, %v245_v25 }
 0x12f   : > { %v254_v27 = vsub.f32 %v227_v13, %v253_v26  ;;  %v255_v28 = vsub.f32 %v240_v14, %v253_v26 }
 0x131   : > { %v256_v29 = vmul.f32 %v254_v27, %v254_v27  ;;  %v257_v30 = vmul.f32 %v255_v28, %v255_v28 }
 0x133   : > { %v258_v31 = vadd.f32 %v257_v30, %v256_v29 }
 0x135   : > { %259 = vadd.xlane.f32.xlu1 %v258_v31 }
 0x1a8   : > { %v260_v32 = vpop.xlane.xlu1 %259 }
 0x1a9   : > { %v261_v33 = vmul.f32 %v260_v32, %v252_v24 }
 0x1ab   : > { %v262_v34 = vadd.f32 1e-05, %v261_v33 }
 0x1ad   : > { %435 = vrsqrt.f32 %v262_v34  ;;  %vm269_vm4 = vweird.f32 %v262_v34 }
 0x1b3   : > { %v436_v35 = vpop.eup %435 }
 0x1b4   : > { %v264_v36 = vmul.f32 %v436_v35, %v262_v34  ;;  %vm270_vm3 = vweird.f32 %v436_v35 }
 0x1b5   : > { %vm271_vm5 = vmor %vm269_vm4, %vm270_vm3 }
 0x1b6   : > { %v265_v37 = vmul.f32 %v436_v35, %v264_v36 }
 0x1b8   : > { %v266_v38 = vmul.f32 0.5, %v265_v37 }
 0x1ba   : > { %v267_v39 = vsub.f32 1.5, %v266_v38 }
 0x1bc   : > { %v268_v40 = vmul.f32 %v436_v35, %v267_v39 }
 0x1be   : > { %v272_v41 = vsel %vm271_vm5, %v436_v35, %v268_v40 }
 0x1bf   : > { %v273_v42 = vmul.f32 %v272_v41, %v254_v27  ;;  %v274_v43 = vmul.f32 %v272_v41, %v255_v28 }
 0x1c1   : > { %v275_v44 = vmax.f32 %v273_v42, 0.0  ;;  %v276_v45 = vmax.f32 %v274_v43, 0.0 }
 0x1c3   : > { %277 = vst [vmem:[%s188_s17] sm:$0xff] %v275_v44 }
 0x1c4   : > { %278 = vst [vmem:[%s188_s17 + $0x8] sm:$0xff] %v276_v45 }
 0x1c5   : > { %494 = shalt.err (!%p491_p4)
}
 0x1c6   : > { %386 = dma.vmem_to_hbm [thread:$0]  (%p607_p11), %s294_s19, 256, %s296_s20, %s280_s16  }
 0x1c7 PF: > { %s307_s26 = sand.u32 1, %s521_s12   ;;  %p700_p7 = scmp.ge.s32.totalorder %s533_s15, 2 }
 0x1c8   : > { %s308_s23 = scalar_lea.sflag [#allocation4], %s307_s26 }
 0x1c9   : > { %p393_p5 = pnand %p700_p7, %p611_p12 }
 0x1cb   : > { %p394_p8 = pneg %p393_p5 }
 0x1cd   : > { %516 = dma.done.wait (%p394_p8), %s308_s23, 256  }
 0x1ce   : > { %518 = vsyncadd (%p394_p8), %s308_s23, 4294967040  ;;  %p16_p10 = scmp.ge.s32.totalorder %s582_s18, 4   ;;  %s701_s12 = smov %s525_s13 }
 0x1cf   : > { %s702_s13 = smov %s529_s14  ;;  %s703_s14 = smov %s594_s21 }
 0x1d0   : > { %s704_s15 = smov %s582_s18  ;;  %18 = sbr.rel (!%p16_p10) target bundleno = 5 (0x5), region = 77 }
 0x1d5   :  { %314 = vsyncpa [#allocation3], 1 }
 0x1d6   :  { %316 = vsyncpa [#allocation3 + $0x1], 1 }
 0x1d7   :  { %317 = vsyncpa [#allocation4], 1 }
 0x1d8   :  { %319 = vsyncpa [#allocation4 + $0x1], 1 }

</bundles_post_ra>
